<compile_context>
chip_gen: v6e
topology: v6e:2x2x1
jax: 0.10.0
libtpu: 0.0.40
codegen_flags: <defaults>
</compile_context>

<pallas_src>
import functools

import jax
import jax.numpy as jnp
from jax.experimental import pallas as pl
from jax.experimental.pallas import tpu as pltpu


def _mask_self_attention_kernel(x_ref, mask_ref, wqkv_ref, wout_ref, bout_ref,
                                out_ref, *attn_refs, heads, scale, approx_recip):
    bb, n, d = x_ref.shape
    dh = d // heads
    g = bb * heads                                   # flattened (batch, head) groups

    x2 = x_ref[...].reshape(bb * n, d)               # (bb*n, d), compute dtype

    # ---- QKV projection: one wide MXU matmul, f32 accumulation -------------
    qkv = jnp.dot(x2, wqkv_ref[...],
                  preferred_element_type=jnp.float32)            # (bb*n, 3d) f32

    # scale q in f32 (matches reference rounding order; exact for pow-2 dim_head)
    q2 = (qkv[:, :d] * scale).astype(x2.dtype)
    k2 = qkv[:, d:2 * d].astype(x2.dtype)
    v2 = qkv[:, 2 * d:].astype(x2.dtype)

    def split_heads(t):
        # (bb*n, d) -> (bb*heads, n, dh), group index = batch*heads + head (b-major)
        parts = [t[:, h * dh:(h + 1) * dh].reshape(bb, n, dh) for h in range(heads)]
        return jnp.stack(parts, axis=1).reshape(g, n, dh)

    q = split_heads(q2)
    k = split_heads(k2)
    v = split_heads(v2)

    # ---- masked scaled-dot-product attention, batched over (batch, head) ----
    bias = jnp.where(mask_ref[...] == 0.0,
                     jnp.float32(-1e9), jnp.float32(0.0))        # (bb, n)
    bias_g = jnp.broadcast_to(bias[:, None, None, :],
                              (bb, heads, 1, n)).reshape(g, 1, n)

    dots = jnp.einsum('gqd,gkd->gqk', q, k,
                      preferred_element_type=jnp.float32) + bias_g  # (g, n, n) f32

    # numerically-stable softmax over the key axis (f32)
    m = jnp.max(dots, axis=-1, keepdims=True)
    e = jnp.exp(dots - m)                                        # EUP
    denom = jnp.sum(e, axis=-1, keepdims=True)
    attn = e * pl.reciprocal(denom, approx=approx_recip)         # EUP, frees VALU

    if attn_refs:                                                # optional writeback
        attn_refs[0][...] = attn.astype(attn_refs[0].dtype)      # (g, n, n), no reshape

    o = jnp.einsum('gqk,gkd->gqd', attn.astype(x2.dtype), v,
                   preferred_element_type=jnp.float32)           # (g, n, dh) f32
    o = o.astype(x2.dtype)

    # ---- output projection: lane-concat heads, single (bb*n, d)@(d, d) matmul ----
    o4 = o.reshape(bb, heads, n, dh)
    o_cat = jnp.concatenate([o4[:, h] for h in range(heads)], axis=-1)   # (bb, n, d)
    out = jnp.dot(o_cat.reshape(bb * n, d), wout_ref[...],
                  preferred_element_type=jnp.float32) + bout_ref[...]    # (bb*n, d) f32
    out_ref[...] = out.astype(out_ref.dtype)


def _default_batch_block(b):
    """Whole batch per grid step on single-TC chips (v5e/v6e); one element per
    step on v7x so the 'parallel' batch axis is sharded across its 2 TensorCores."""
    try:
        kind = jax.devices()[0].device_kind.lower()
    except Exception:
        return b
    return 1 if ("v7" in kind and b > 1) else b


def mask_self_attention(x, mask, w_qkv, w_out, b_out, *, heads,
                        compute_dtype=jnp.bfloat16, return_attn=True,
                        batch_block=None):
    """x: [b, n, d] f32, mask: [b, n] (0 => ignore key).

    Returns (out, attn) if return_attn else out.  compute_dtype=jnp.float32 is the
    bit-faithful test oracle; bf16 (default) is the shipped MXU path.
    """
    b, n, d = x.shape
    assert d % heads == 0
    dh = d // heads
    scale = float(dh) ** (-0.5)

    if batch_block is None:
        batch_block = _default_batch_block(b)
    bb = int(batch_block)
    assert b % bb == 0
    grid = (b // bb,)

    x_c = x.astype(compute_dtype)
    w_qkv_c = w_qkv.astype(compute_dtype)            # (d, 3d)
    w_out_c = w_out.astype(compute_dtype)            # (d, d)
    b_out_2d = b_out.reshape(1, d).astype(jnp.float32)
    mask_f = mask.astype(jnp.float32)

    kernel = functools.partial(
        _mask_self_attention_kernel, heads=heads, scale=scale,
        approx_recip=(compute_dtype != jnp.float32))

    # Outputs are shaped so the kernel stores them without any in-kernel reshape;
    # the wrapper reshapes are free row-major views.
    out_shapes = [jax.ShapeDtypeStruct((b * n, d), jnp.float32)]
    out_specs = [pl.BlockSpec((bb * n, d), lambda i: (i, 0))]
    if return_attn:
        out_shapes.append(jax.ShapeDtypeStruct((b * heads, n, n), jnp.float32))
        out_specs.append(pl.BlockSpec((bb * heads, n, n), lambda i: (i, 0, 0)))

    grid_spec = pltpu.PrefetchScalarGridSpec(
        num_scalar_prefetch=0,
        grid=grid,
        in_specs=[
            pl.BlockSpec((bb, n, d), lambda i: (i, 0, 0)),    # x
            pl.BlockSpec((bb, n), lambda i: (i, 0)),          # mask
            pl.BlockSpec((d, 3 * d), lambda i: (0, 0)),       # W_qkv (resident)
            pl.BlockSpec((d, d), lambda i: (0, 0)),           # W_out (resident)
            pl.BlockSpec((1, d), lambda i: (0, 0)),           # b_out (resident)
        ],
        out_specs=out_specs,
    )

    results = pl.pallas_call(
        kernel,
        out_shape=tuple(out_shapes),
        grid_spec=grid_spec,
        compiler_params=pltpu.CompilerParams(
            dimension_semantics=("parallel",),
            # 32 MiB is plenty at these shapes; raise toward 64-100 MiB on v6e when
            # scaling n/d, keep <= ~48 MiB on v7x (64 MiB physical VMEM).
            vmem_limit_bytes=32 * 1024 * 1024),
    )(x_c, mask_f, w_qkv_c, w_out_c, b_out_2d)

    out = results[0].reshape(b, n, d)
    if return_attn:
        attn = results[1].reshape(b, heads, n, n)
        return out, attn
    return out


def _reference(x, mask, w_qkv, w_out, b_out, *, heads):
    """Pure-JAX reference mirroring the PyTorch forward."""
    b, n, d = x.shape
    dh = d // heads
    scale = dh ** (-0.5)
    qkv = x @ w_qkv                                    # (b, n, 3d)
    q, k, v = jnp.split(qkv, 3, axis=-1)

    def to_heads(t):
        return t.reshape(b, n, heads, dh).transpose(0, 2, 1, 3)   # (b, h, n, dh)

    q, k, v = map(to_heads, (q, k, v))
    dots = jnp.einsum("bhqd,bhkd->bhqk", q, k) * scale
    key_mask = (mask == 0.0)[:, None, None, :]          # (b, 1, 1, n)
    dots = jnp.where(key_mask, -1e9, dots)
    attn = jax.nn.softmax(dots, axis=-1)
    o = jnp.einsum("bhqk,bhkd->bhqd", attn, v)
    o = o.transpose(0, 2, 1, 3).reshape(b, n, d)
    return o @ w_out + b_out, attn


if __name__ == "__main__":
    B, N, D, HEADS = 2, 8, 32, 2

    key = jax.random.PRNGKey(0)
    kx, kq, ko, kb = jax.random.split(key, 4)

    x = jax.random.normal(kx, (B, N, D), dtype=jnp.float32)
    # mask: ignore the last 3 tokens of batch element 1
    mask = jnp.ones((B, N), dtype=jnp.float32)
    mask = mask.at[1, N - 3:].set(0.0)

    # Deterministic synthetic parameters (shapes from the module's __init__).
    w_qkv = jax.random.normal(kq, (D, 3 * D), dtype=jnp.float32) * 0.05
    w_out = jax.random.normal(ko, (D, D), dtype=jnp.float32) * 0.05
    b_out = jax.random.normal(kb, (D,), dtype=jnp.float32) * 0.05
    # TODO(synk): nn.Dropout is identity in eval mode; not modeled in-kernel.

    ref_out, ref_attn = _reference(x, mask, w_qkv, w_out, b_out, heads=HEADS)

    # Exact oracle (f32 MXU inputs, exact reciprocal), device-default grid.
    out32, attn32 = mask_self_attention(x, mask, w_qkv, w_out, b_out,
                                        heads=HEADS, compute_dtype=jnp.float32)
    out32 = jax.block_until_ready(out32)
    attn32 = jax.block_until_ready(attn32)
    assert out32.shape == (B, N, D) and attn32.shape == (B, HEADS, N, N)
    assert jnp.allclose(out32, ref_out, atol=2e-4, rtol=2e-4)
    assert jnp.allclose(attn32, ref_attn, atol=2e-4, rtol=2e-4)

    # Shipped bf16 path, collapsed batch grid (single grid step: v5e/v6e layout).
    out16, attn16 = mask_self_attention(x, mask, w_qkv, w_out, b_out,
                                        heads=HEADS, compute_dtype=jnp.bfloat16,
                                        batch_block=B)
    out16 = jax.block_until_ready(out16)
    attn16 = jax.block_until_ready(attn16)
    assert out16.shape == (B, N, D) and attn16.shape == (B, HEADS, N, N)
    assert jnp.allclose(out16, ref_out, atol=1e-2, rtol=1e-2)
    assert jnp.allclose(attn16, ref_attn, atol=1e-2, rtol=1e-2)

    # v7x-style layout: one batch element per grid step ("parallel" over 2 TCs).
    out_v7, attn_v7 = mask_self_attention(x, mask, w_qkv, w_out, b_out,
                                          heads=HEADS, compute_dtype=jnp.bfloat16,
                                          batch_block=1)
    out_v7 = jax.block_until_ready(out_v7)
    attn_v7 = jax.block_until_ready(attn_v7)
    assert jnp.allclose(out_v7, ref_out, atol=1e-2, rtol=1e-2)
    assert jnp.allclose(attn_v7, ref_attn, atol=1e-2, rtol=1e-2)

    # Out-only path: skips the n^2 attention writeback (v5e HBM roofline item).
    out_only = mask_self_attention(x, mask, w_qkv, w_out, b_out,
                                   heads=HEADS, compute_dtype=jnp.bfloat16,
                                   return_attn=False)
    out_only = jax.block_until_ready(out_only)
    assert out_only.shape == (B, N, D)
    assert jnp.allclose(out_only, ref_out, atol=1e-2, rtol=1e-2)

    print("KERNEL_OK")
</pallas_src>

<mosaic_0001>
module attributes {stable_mosaic.version = 11 : i64} {
  func.func @_mask_self_attention_kernel(%arg0: i32, %arg1: memref<2x8x32xf32, #tpu.memory_space<vmem>>, %arg2: memref<2x8xf32, #tpu.memory_space<vmem>>, %arg3: memref<32x96xf32, #tpu.memory_space<vmem>>, %arg4: memref<32x32xf32, #tpu.memory_space<vmem>>, %arg5: memref<1x32xf32, #tpu.memory_space<vmem>>, %arg6: memref<16x32xf32, #tpu.memory_space<vmem>>, %arg7: memref<4x8x8xf32, #tpu.memory_space<vmem>>) attributes {dimension_semantics = [#tpu.dimension_semantics<parallel>], iteration_bounds = array<i64: 1>, scalar_prefetch = 0 : i64, scratch_operands = 0 : i64, tpu.core_type = #tpu.core_type<tc>, window_params = [{transform_indices = @transform_0, window_bounds = array<i64: 2, 8, 32>}, {transform_indices = @transform_1, window_bounds = array<i64: 2, 8>}, {pipeline_mode = #tpu.pipeline_mode<synchronous>, transform_indices = @transform_2, window_bounds = array<i64: 32, 96>}, {pipeline_mode = #tpu.pipeline_mode<synchronous>, transform_indices = @transform_3, window_bounds = array<i64: 32, 32>}, {pipeline_mode = #tpu.pipeline_mode<synchronous>, transform_indices = @transform_4, window_bounds = array<i64: 1, 32>}, {transform_indices = @transform_5, window_bounds = array<i64: 16, 32>}, {transform_indices = @transform_6, window_bounds = array<i64: 4, 8, 8>}]} {
    %c0 = arith.constant 0 : index
    %c0_0 = arith.constant 0 : index
    %c0_1 = arith.constant 0 : index
    %0 = vector.load %arg1[%c0, %c0_0, %c0_1] : memref<2x8x32xf32, #tpu.memory_space<vmem>>, vector<2x8x32xf32>
    %1 = vector.shape_cast %0 : vector<2x8x32xf32> to vector<16x32xf32>
    %c0_2 = arith.constant 0 : index
    %c0_3 = arith.constant 0 : index
    %2 = vector.load %arg3[%c0_2, %c0_3] : memref<32x96xf32, #tpu.memory_space<vmem>>, vector<32x96xf32>
    %cst = arith.constant dense<0.000000e+00> : vector<16x96xf32>
    %3 = tpu.matmul %1, %2, %cst {dimension_numbers = #tpu.dot_dimension_numbers<[1], [0], [0], [1], [0, 0, 1, 1], [], []>} : vector<16x32xf32>, vector<32x96xf32>, vector<16x96xf32> -> vector<16x96xf32>
    %4 = vector.extract_strided_slice %3 {offsets = [0, 0], sizes = [16, 32], strides = [1, 1]} : vector<16x96xf32> to vector<16x32xf32>
    %cst_4 = arith.constant 2.500000e-01 : f32
    %5 = vector.broadcast %cst_4 : f32 to vector<16x32xf32>
    %6 = arith.mulf %4, %5 : vector<16x32xf32>
    %7 = vector.extract_strided_slice %3 {offsets = [0, 32], sizes = [16, 32], strides = [1, 1]} : vector<16x96xf32> to vector<16x32xf32>
    %8 = vector.extract_strided_slice %3 {offsets = [0, 64], sizes = [16, 32], strides = [1, 1]} : vector<16x96xf32> to vector<16x32xf32>
    %9 = vector.extract_strided_slice %6 {offsets = [0, 0], sizes = [16, 16], strides = [1, 1]} : vector<16x32xf32> to vector<16x16xf32>
    %10 = vector.shape_cast %9 : vector<16x16xf32> to vector<2x8x16xf32>
    %11 = vector.extract_strided_slice %6 {offsets = [0, 16], sizes = [16, 16], strides = [1, 1]} : vector<16x32xf32> to vector<16x16xf32>
    %12 = vector.shape_cast %11 : vector<16x16xf32> to vector<2x8x16xf32>
    %13 = vector.shape_cast %10 : vector<2x8x16xf32> to vector<2x1x8x16xf32>
    %14 = vector.shape_cast %12 : vector<2x8x16xf32> to vector<2x1x8x16xf32>
    %15 = tpu.concatenate %13, %14 in 1 : vector<2x1x8x16xf32>, vector<2x1x8x16xf32> -> vector<2x2x8x16xf32>
    %16 = vector.shape_cast %15 : vector<2x2x8x16xf32> to vector<4x8x16xf32>
    %17 = vector.extract_strided_slice %7 {offsets = [0, 0], sizes = [16, 16], strides = [1, 1]} : vector<16x32xf32> to vector<16x16xf32>
    %18 = vector.shape_cast %17 : vector<16x16xf32> to vector<2x8x16xf32>
    %19 = vector.extract_strided_slice %7 {offsets = [0, 16], sizes = [16, 16], strides = [1, 1]} : vector<16x32xf32> to vector<16x16xf32>
    %20 = vector.shape_cast %19 : vector<16x16xf32> to vector<2x8x16xf32>
    %21 = vector.shape_cast %18 : vector<2x8x16xf32> to vector<2x1x8x16xf32>
    %22 = vector.shape_cast %20 : vector<2x8x16xf32> to vector<2x1x8x16xf32>
    %23 = tpu.concatenate %21, %22 in 1 : vector<2x1x8x16xf32>, vector<2x1x8x16xf32> -> vector<2x2x8x16xf32>
    %24 = vector.shape_cast %23 : vector<2x2x8x16xf32> to vector<4x8x16xf32>
    %25 = vector.extract_strided_slice %8 {offsets = [0, 0], sizes = [16, 16], strides = [1, 1]} : vector<16x32xf32> to vector<16x16xf32>
    %26 = vector.shape_cast %25 : vector<16x16xf32> to vector<2x8x16xf32>
    %27 = vector.extract_strided_slice %8 {offsets = [0, 16], sizes = [16, 16], strides = [1, 1]} : vector<16x32xf32> to vector<16x16xf32>
    %28 = vector.shape_cast %27 : vector<16x16xf32> to vector<2x8x16xf32>
    %29 = vector.shape_cast %26 : vector<2x8x16xf32> to vector<2x1x8x16xf32>
    %30 = vector.shape_cast %28 : vector<2x8x16xf32> to vector<2x1x8x16xf32>
    %31 = tpu.concatenate %29, %30 in 1 : vector<2x1x8x16xf32>, vector<2x1x8x16xf32> -> vector<2x2x8x16xf32>
    %32 = vector.shape_cast %31 : vector<2x2x8x16xf32> to vector<4x8x16xf32>
    %c0_5 = arith.constant 0 : index
    %c0_6 = arith.constant 0 : index
    %33 = vector.load %arg2[%c0_5, %c0_6] : memref<2x8xf32, #tpu.memory_space<vmem>>, vector<2x8xf32>
    %cst_7 = arith.constant 0.000000e+00 : f32
    %34 = vector.broadcast %cst_7 : f32 to vector<2x8xf32>
    %35 = arith.cmpf oeq, %33, %34 : vector<2x8xf32>
    %cst_8 = arith.constant -1.000000e+09 : f32
    %cst_9 = arith.constant 0.000000e+00 : f32
    %36 = vector.broadcast %cst_8 : f32 to vector<2x8xf32>
    %37 = vector.broadcast %cst_9 : f32 to vector<2x8xf32>
    %38 = arith.select %35, %36, %37 : vector<2x8xi1>, vector<2x8xf32>
    %39 = vector.shape_cast %38 : vector<2x8xf32> to vector<2x1x1x8xf32>
    %40 = vector.shape_cast %39 : vector<2x1x1x8xf32> to vector<2x1x1x8xf32>
    %41 = vector.broadcast %40 : vector<2x1x1x8xf32> to vector<2x2x1x8xf32>
    %42 = vector.shape_cast %41 : vector<2x2x1x8xf32> to vector<4x1x8xf32>
    "tpu.trace_start"() <{level = 10 : i32, message = "gqd,gkd->gqk"}> : () -> ()
    %cst_10 = arith.constant dense<0.000000e+00> : vector<4x8x8xf32>
    %43 = tpu.matmul %16, %24, %cst_10 {dimension_numbers = #tpu.dot_dimension_numbers<[2], [2], [1], [1], [0, 0, 0, 1, 1, 1], [0], [0]>} : vector<4x8x16xf32>, vector<4x8x16xf32>, vector<4x8x8xf32> -> vector<4x8x8xf32>
    "tpu.trace_stop"() : () -> ()
    %44 = vector.broadcast %42 : vector<4x1x8xf32> to vector<4x8x8xf32>
    %45 = arith.addf %43, %44 : vector<4x8x8xf32>
    %cst_11 = arith.constant dense<0xFF800000> : vector<4x8xf32>
    %46 = vector.multi_reduction <maximumf>, %45, %cst_11 [2] : vector<4x8x8xf32> to vector<4x8xf32>
    %47 = vector.shape_cast %46 : vector<4x8xf32> to vector<4x8x1xf32>
    %48 = vector.broadcast %47 : vector<4x8x1xf32> to vector<4x8x8xf32>
    %49 = arith.subf %45, %48 : vector<4x8x8xf32>
    %50 = math.exp %49 : vector<4x8x8xf32>
    %cst_12 = arith.constant dense<0.000000e+00> : vector<4x8xf32>
    %51 = vector.multi_reduction <add>, %50, %cst_12 [2] : vector<4x8x8xf32> to vector<4x8xf32>
    %52 = vector.shape_cast %51 : vector<4x8xf32> to vector<4x8x1xf32>
    %53 = tpu.reciprocal %52 : vector<4x8x1xf32> -> vector<4x8x1xf32>
    %54 = vector.broadcast %53 : vector<4x8x1xf32> to vector<4x8x8xf32>
    %55 = arith.mulf %50, %54 : vector<4x8x8xf32>
    %c0_13 = arith.constant 0 : index
    %c0_14 = arith.constant 0 : index
    %c0_15 = arith.constant 0 : index
    %56 = vector.load %arg7[%c0_13, %c0_14, %c0_15] : memref<4x8x8xf32, #tpu.memory_space<vmem>>, vector<4x8x8xf32>
    tpu.vector_store %arg7[%c0_13, %c0_14, %c0_15], %55 {strides = array<i32>} : memref<4x8x8xf32, #tpu.memory_space<vmem>>, vector<4x8x8xf32>,
    "tpu.trace_start"() <{level = 10 : i32, message = "gqk,gkd->gqd"}> : () -> ()
    %cst_16 = arith.constant dense<0.000000e+00> : vector<4x8x16xf32>
    %57 = tpu.matmul %55, %32, %cst_16 {dimension_numbers = #tpu.dot_dimension_numbers<[2], [1], [1], [2], [0, 0, 0, 1, 1, 2], [0], [0]>} : vector<4x8x8xf32>, vector<4x8x16xf32>, vector<4x8x16xf32> -> vector<4x8x16xf32>
    "tpu.trace_stop"() : () -> ()
    %58 = vector.shape_cast %57 : vector<4x8x16xf32> to vector<2x2x8x16xf32>
    %59 = vector.extract_strided_slice %58 {offsets = [0, 0, 0, 0], sizes = [2, 1, 8, 16], strides = [1, 1, 1, 1]} : vector<2x2x8x16xf32> to vector<2x1x8x16xf32>
    %60 = vector.shape_cast %59 : vector<2x1x8x16xf32> to vector<2x8x16xf32>
    %61 = vector.extract_strided_slice %58 {offsets = [0, 1, 0, 0], sizes = [2, 1, 8, 16], strides = [1, 1, 1, 1]} : vector<2x2x8x16xf32> to vector<2x1x8x16xf32>
    %62 = vector.shape_cast %61 : vector<2x1x8x16xf32> to vector<2x8x16xf32>
    %63 = tpu.concatenate %60, %62 in 2 : vector<2x8x16xf32>, vector<2x8x16xf32> -> vector<2x8x32xf32>
    %64 = vector.shape_cast %63 : vector<2x8x32xf32> to vector<16x32xf32>
    %c0_17 = arith.constant 0 : index
    %c0_18 = arith.constant 0 : index
    %65 = vector.load %arg4[%c0_17, %c0_18] : memref<32x32xf32, #tpu.memory_space<vmem>>, vector<32x32xf32>
    %cst_19 = arith.constant dense<0.000000e+00> : vector<16x32xf32>
    %66 = tpu.matmul %64, %65, %cst_19 {dimension_numbers = #tpu.dot_dimension_numbers<[1], [0], [0], [1], [0, 0, 1, 1], [], []>} : vector<16x32xf32>, vector<32x32xf32>, vector<16x32xf32> -> vector<16x32xf32>
    %c0_20 = arith.constant 0 : index
    %c0_21 = arith.constant 0 : index
    %67 = vector.load %arg5[%c0_20, %c0_21] : memref<1x32xf32, #tpu.memory_space<vmem>>, vector<1x32xf32>
    %68 = vector.broadcast %67 : vector<1x32xf32> to vector<16x32xf32>
    %69 = arith.addf %66, %68 : vector<16x32xf32>
    %c0_22 = arith.constant 0 : index
    %c0_23 = arith.constant 0 : index
    %70 = vector.load %arg6[%c0_22, %c0_23] : memref<16x32xf32, #tpu.memory_space<vmem>>, vector<16x32xf32>
    tpu.vector_store %arg6[%c0_22, %c0_23], %69 {strides = array<i32>} : memref<16x32xf32, #tpu.memory_space<vmem>>, vector<16x32xf32>,
    return
  }
  func.func @transform_0(%arg0: i32) -> (i32, i32, i32) {
    %c0_i32 = arith.constant 0 : i32
    %c0_i32_0 = arith.constant 0 : i32
    %c0_i32_1 = arith.constant 0 : i32
    return %arg0, %c0_i32, %c0_i32_0 : i32, i32, i32
  }
  func.func @transform_1(%arg0: i32) -> (i32, i32) {
    %c0_i32 = arith.constant 0 : i32
    %c0_i32_0 = arith.constant 0 : i32
    return %arg0, %c0_i32 : i32, i32
  }
  func.func @transform_2(%arg0: i32) -> (i32, i32) {
    %c0_i32 = arith.constant 0 : i32
    %c0_i32_0 = arith.constant 0 : i32
    %c0_i32_1 = arith.constant 0 : i32
    return %c0_i32, %c0_i32_0 : i32, i32
  }
  func.func @transform_3(%arg0: i32) -> (i32, i32) {
    %c0_i32 = arith.constant 0 : i32
    %c0_i32_0 = arith.constant 0 : i32
    %c0_i32_1 = arith.constant 0 : i32
    return %c0_i32, %c0_i32_0 : i32, i32
  }
  func.func @transform_4(%arg0: i32) -> (i32, i32) {
    %c0_i32 = arith.constant 0 : i32
    %c0_i32_0 = arith.constant 0 : i32
    %c0_i32_1 = arith.constant 0 : i32
    return %c0_i32, %c0_i32_0 : i32, i32
  }
  func.func @transform_5(%arg0: i32) -> (i32, i32) {
    %c0_i32 = arith.constant 0 : i32
    %c0_i32_0 = arith.constant 0 : i32
    return %arg0, %c0_i32 : i32, i32
  }
  func.func @transform_6(%arg0: i32) -> (i32, i32, i32) {
    %c0_i32 = arith.constant 0 : i32
    %c0_i32_0 = arith.constant 0 : i32
    %c0_i32_1 = arith.constant 0 : i32
    return %arg0, %c0_i32, %c0_i32_0 : i32, i32, i32
  }
}

</mosaic_0001>

<bundles_post_ra>
// kernel: tpu_custom_call.1
= control target key start
LH: loop header
LB: loop body
LE: loop exit
PB: predicated region body
PF: predicated region fallthrough
CT: control target
= control target key end

     0   :  { %12 = vsyncpa [#allocation3], 0  ;;  %s1443_s0 = inlined_call_operand.hbm [shape: f32[2,8,32], index: 0, kind: input, shape index: {}]   ;;  %s1444_s1 = inlined_call_operand.hbm [shape: f32[2,8], index: 1, kind: input, shape index: {}]   ;;  %s1445_s2 = inlined_call_operand.hbm [shape: f32[32,96], index: 2, kind: input, shape index: {}]   ;;  %s1446_s3 = inlined_call_operand.hbm [shape: f32[32,32], index: 3, kind: input, shape index: {}]   ;;  %s1447_s4 = inlined_call_operand.vmem [shape: f32[1,32], index: 4, kind: input, shape index: {}]   ;;  %s1448_s5 = inlined_call_operand.hbm [shape: f32[16,32], index: 5, kind: output, shape index: {0}]   ;;  %s1449_s6 = inlined_call_operand.hbm [shape: f32[4,8,8], index: 6, kind: output, shape index: {1}]  }
   0x1   :  { %13 = vsyncpa [#allocation6], 0 }
   0x2   :  { %14 = vsyncpa [#allocation9], 0 }
   0x3   :  { %15 = vsyncpa [#allocation4], 0 }
   0x4   :  { %16 = vsyncpa [#allocation12], 0  ;;  %s1280_s21 = smov [#allocation5]   ;;  %s1281_s23 = smov [#allocation2]  }
   0x5   :  { %s35_s22 = sshll.u32 %s1280_s21, 4  ;;  %s22_s24 = sshll.u32 %s1281_s23, 4  ;;  %s36_s22 = int_to_ptr.vmem [resolvable:$true] %s35_s22  ;;  %s23_s24 = int_to_ptr.vmem [resolvable:$true] %s22_s24 }
   0x6   :  { %s1158_s25 = scalar_lea.vmem %s36_s22, 32  ;;  %p1163_p1 = scmp.lt.s32.totalorder %s36_s22, %s36_s22 }
   0x7   :  { %p1159_p0 = scmp.ne.s32.totalorder %s36_s22, %s1158_s25  ;;  %p1164_p2 = scmp.lt.s32.totalorder %s1158_s25, %s1158_s25 }
   0x9   :  { %p1165_p3 = por %p1164_p2, %p1163_p1 }
   0xb   :  { %p1166_p4 = pnand %p1165_p3, %p1159_p0 }
   0xd   :  { %1169 = shalt.err (!%p1166_p4)
}
   0xe   :  { %38 = dma.hbm_to_vmem [thread:$0]  %s1444_s1, 32, %s36_s22, [#allocation6]  }
   0xf   :  { %s1178_s28 = scalar_lea.vmem %s23_s24, 256  ;;  %p1183_p6 = scmp.lt.s32.totalorder %s23_s24, %s23_s24 }
  0x10   :  { %p1179_p5 = scmp.ne.s32.totalorder %s23_s24, %s1178_s28  ;;  %p1184_p7 = scmp.lt.s32.totalorder %s1178_s28, %s1178_s28 }
  0x12   :  { %p1185_p8 = por %p1184_p7, %p1183_p6 }
  0x14   :  { %p1186_p9 = pnand %p1185_p8, %p1179_p5 }
  0x16   :  { %1189 = shalt.err (!%p1186_p9)
}
  0x17   :  { %s1282_s29 = smov 128   ;;  %s1283_s30 = smov 8  }
  0x18   :  { %28 = dma.hbm_to_vmem [thread:$0]  %s1443_s0, 256, %s23_s24, [#allocation3], %s1282_s29, %s1282_s29, %s1283_s30  }
  0x19   :  { %s1284_s9 = smov [#allocation7]   ;;  %s1285_s11 = smov [#allocation8]  }
  0x1a   :  { %s44_s10 = sshll.u32 %s1284_s9, 4  ;;  %s56_s1 = sshll.u32 %s1285_s11, 4  ;;  %s45_s10 = int_to_ptr.vmem [resolvable:$true] %s44_s10  ;;  %s57_s1 = int_to_ptr.vmem [resolvable:$true] %s56_s1 }
  0x1b   :  { %s1198_s12 = scalar_lea.vmem %s45_s10, 512  ;;  %p1203_p11 = scmp.lt.s32.totalorder %s45_s10, %s45_s10 }
  0x1c   :  { %p1199_p10 = scmp.ne.s32.totalorder %s45_s10, %s1198_s12  ;;  %p1204_p12 = scmp.lt.s32.totalorder %s1198_s12, %s1198_s12 }
  0x1e   :  { %p1205_p13 = por %p1204_p12, %p1203_p11 }
  0x20   :  { %p1206_p0 = pnand %p1205_p13, %p1199_p10 }
  0x22   :  { %1209 = shalt.err (!%p1206_p0)
}
  0x23   :  { %50 = dma.hbm_to_vmem [thread:$0]  %s1445_s2, 512, %s45_s10, [#allocation6], %s1282_s29, %s1282_s29, %s1283_s30  }
  0x24   :  { %s1218_s0 = scalar_lea.vmem %s57_s1, 512  ;;  %p1223_p2 = scmp.lt.s32.totalorder %s57_s1, %s57_s1 }
  0x25   :  { %p1219_p1 = scmp.ne.s32.totalorder %s57_s1, %s1218_s0  ;;  %p1224_p3 = scmp.lt.s32.totalorder %s1218_s0, %s1218_s0 }
  0x27   :  { %p1225_p4 = por %p1224_p3, %p1223_p2 }
  0x29   :  { %p1226_p5 = pnand %p1225_p4, %p1219_p1 }
  0x2b   :  { %1229 = shalt.err (!%p1226_p5)
}
  0x2c   :  { %62 = dma.hbm_to_vmem [thread:$0]  %s1446_s3, 512, %s57_s1, [#allocation9], %s1282_s29, %s1282_s29, %s1283_s30  }
  0x2d   :  { %1270 = dma.done.wait [#allocation3], 256  }
  0x2e   :  { %1271 = vsyncadd [#allocation3], 4294967040 }
  0x2f   :  { %1272 = dma.done.wait [#allocation6], 544  }
  0x30   :  { %1273 = vsyncadd [#allocation6], 4294966752 }
  0x31   :  { %1274 = dma.done.wait [#allocation9], 512  }
  0x32   :  { %1275 = vsyncadd [#allocation9], 4294966784  ;;  %vm83_vm0 = vcmask 261120   ;;  %v82_v0 = vld [vmem:[#allocation7 + $0x18] sm:$0xff]  ;;  %v81_v1 = vld [vmem:[#allocation7 + $0x10] sm:$0xff]  ;;  %v1286_v6 = vmov 0.0   ;;  %v186_v23 = vlaneseq }
  0x33   :  { %1057 = vmatprep.subr.mxu0 %v82_v0  ;;  %v77_v2 = vld [vmem:[#allocation2] sm:$0xff]  ;;  %v79_v4 = vld [vmem:[#allocation7] sm:$0xff]  ;;  %v78_v5 = vld [vmem:[#allocation2 + $0x8] sm:$0xff]  ;;  %1068 = vmatprep.subr.mxu1 %v1286_v6  ;;  %vm1287_vm1 = vmmov 0   ;;  %s1288_s2 = smov 96   ;;  %s1289_s3 = smov 112  }
  0x34   :  { %1058 = vmatpush3.msra.mxu0 %v82_v0  ;;  %v80_v3 = vld [vmem:[#allocation7 + $0x8] sm:$0xff]  ;;  %1065 = vmatprep.mubr.msk.f32.mxu0 %vm83_vm0, %v77_v2  ;;  %vm217_vm2 = vcmask 130048   ;;  %v1290_v21 = vmov 1966171168   ;;  %v179_v24 = vld [vmem:[#allocation5] sm:$0x3] }
  0x35   :  { %1059 = vmatprep.subr.mxu0 %v81_v1  ;;  %1070 = vmatprep.mubr.msk.f32.mxu1 %vm1287_vm1, %v1286_v6  ;;  %v184_v22 = vunpack.c.l.s4 %v1290_v21  ;;  %v187_v26 = vshrl.u32 %v186_v23, 7  ;;  %vm180_vm3 = vcmp.eq.f32.partialorder %v179_v24, 0.0  ;;  %vm520_vm4 = vcmask 64512   ;;  %s1291_s17 = smov 64   ;;  %v886_v23 = vld [vmem:[#allocation8 + $0x18] sm:$0xff]  ;;  %v885_v24 = vld [vmem:[#allocation8 + $0x10] sm:$0xff] }
  0x36   :  { %1060 = vmatpush3.msra.mxu0 %v81_v1  ;;  %v181_v28 = vsel %vm180_vm3, -1e+09, %v1286_v6  ;;  %s1292_s18 = smov 16   ;;  %s1293_s19 = smov [#allocation11]  }
  0x37   :  { %1061 = vmatprep.subr.mxu0 %v80_v3  ;;  %v185_v25 = vunpack.c.0.s8 %v184_v22  ;;  %v207_v31 = vsub.s32 0, %v187_v26  ;;  %s994_s20 = sshll.u32 %s1293_s19, 4  ;;  %s995_s20 = int_to_ptr.vmem [resolvable:$true] %s994_s20 }
  0x38   :  { %1062 = vmatpush3.msra.mxu0 %v80_v3  ;;  %s1230_s21 = scalar_lea.vmem %s995_s20, 512  ;;  %p1235_p7 = scmp.lt.s32.totalorder %s995_s20, %s995_s20 }
  0x39   :  { %1063 = vmatprep.subr.mxu0 %v79_v4  ;;  %v188_v27 = vsub.s32 %v185_v25, %v187_v26  ;;  %v884_v25 = vld [vmem:[#allocation8 + $0x8] sm:$0xff]  ;;  %v883_v26 = vld [vmem:[#allocation8] sm:$0xff]  ;;  %p1231_p6 = scmp.ne.s32.totalorder %s995_s20, %s1230_s21  ;;  %p1236_p8 = scmp.lt.s32.totalorder %s1230_s21, %s1230_s21 }
  0x3a   :  { %1064 = vmatpush3.msra.mxu0 %v79_v4 }
  0x3b   :  { %1066 = vmatmul.mubr.msk.f32.vlgmr.msra.gmra.mxu0 %vm83_vm0, %v78_v5  ;;  %1088 = vmatprep.subr.mxu0 %v1286_v6  ;;  %v189_v29 = vrot.slane %v181_v28, %v188_v27  ;;  %p1237_p9 = por %p1236_p8, %p1235_p7 }
  0x3c   :  { %1090 = vmatprep.mubr.msk.f32.mxu0 %vm1287_vm1, %v1286_v6 }
  0x3d   :  { %v197_v30 = vrot.slane %v189_v29, %v188_v27  ;;  %v190_v32 = vcombine.high %v189_v29, %v189_v29  ;;  %p1238_p10 = pnand %p1237_p9, %p1231_p6 }
  0x3f   :  { %v208_v33 = vrot.slane %v197_v30, %v207_v31  ;;  %v204_v34 = vrot.slane %v190_v32, %v188_v27 }
  0x41   :  { %v212_v40 = vrot.slane %v204_v34, %v207_v31 }
  0xfb   :  { %v1359_v7 = vpop.f32.mrf.mxu0 }
  0xfc   :  { %v166_v13 = vmul.f32 0.25, %v1359_v7 }
  0xfd   :  { %v1361_v8 = vpop.f32.mrf.mxu0 }
  0xfe   :  { %215 = vrot.lane.b32.xlu1 %v1361_v8, %s1288_s2  ;;  %175 = vrot.lane.b32.xlu0 %v1361_v8, %s1289_s3  ;;  %v165_v9 = vmul.f32 0.25, %v1361_v8 }
 0x102   :  { %177 = vrot.lane.b32.xlu0 %v1359_v7, %s1289_s3 }
 0x106   :  { %169 = vrot.lane.b32.xlu0 %v165_v9, %s1289_s3 }
 0x170   :  { %v216_v10 = vpop.permute.xlu1 %215  ;;  %v1367_v11 = vpop.permute.xlu0 %175 }
 0x171   :  { %1069 = vmatpush3.xpose.msk.msra.mxu1 %vm217_vm2, %v216_v10  ;;  %292 = vrot.lane.b32.xlu1 %v1367_v11, %s1288_s2 }
 0x172   :  { %1073 = vmatprep.subr.mxu1 %v1286_v6 }
 0x174   :  { %v1372_v12 = vpop.permute.xlu0 %177  ;;  %1071 = vmatmul.mubr.msk.f32.vlgmr.msra.gmra.mxu1 %vm217_vm2, %v165_v9 }
 0x175   :  { %368 = vrot.lane.b32.xlu1 %v1359_v7, %s1288_s2  ;;  %444 = vrot.lane.b32.xlu0 %v1372_v12, %s1288_s2 }
 0x176   :  { %1075 = vmatprep.mubr.msk.f32.mxu1 %vm1287_vm1, %v1286_v6 }
 0x178   :  { %v170_v15 = vpop.permute.xlu0 %169 }
 0x179   :  { %171 = vrot.lane.b32.xlu1 %v166_v13, %s1289_s3 }
 0x1e3   :  { %v293_v14 = vpop.permute.xlu1 %292 }
 0x1e4   :  { %1074 = vmatpush3.xpose.msk.msra.mxu1 %vm217_vm2, %v293_v14 }
 0x1e5   :  { %1078 = vmatprep.subr.mxu1 %v1286_v6 }
 0x1e7   :  { %v369_v16 = vpop.permute.xlu1 %368  ;;  %1076 = vmatmul.mubr.msk.f32.vlgmr.msra.gmra.mxu1 %vm217_vm2, %v170_v15  ;;  %v445_v17 = vpop.permute.xlu0 %444 }
 0x1e8   :  { %1079 = vmatpush3.xpose.msk.msra.mxu1 %vm217_vm2, %v369_v16  ;;  %1080 = vmatprep.mubr.msk.f32.mxu1 %vm1287_vm1, %v1286_v6 }
 0x1e9   :  { %1083 = vmatprep.subr.mxu1 %v1286_v6 }
 0x1eb   :  { %1081 = vmatmul.mubr.msk.f32.vlgmr.msra.gmra.mxu1 %vm217_vm2, %v166_v13  ;;  %v172_v18 = vpop.permute.xlu1 %171 }
 0x1ec   :  { %1084 = vmatpush3.xpose.msk.msra.mxu1 %vm217_vm2, %v445_v17  ;;  %1085 = vmatprep.mubr.msk.f32.mxu1 %vm1287_vm1, %v1286_v6 }
 0x1ed   :  { %1093 = vmatprep.subr.mxu1 %v1286_v6 }
 0x1ef   :  { %1086 = vmatmul.mubr.msk.f32.vlgmr.msra.gmra.mxu1 %vm217_vm2, %v172_v18 }
 0x1f0   :  { %1095 = vmatprep.mubr.msk.f32.mxu1 %vm1287_vm1, %v1286_v6 }
 0x234   :  { %v288_v19 = vpop.f32.mrf.mxu1 }
 0x235   :  { %v289_v38 = vadd.f32 %v288_v19, %v208_v33 }
 0x236   :  { %v1072_v20 = vpop.f32.mrf.mxu1 }
 0x237   :  { %v521_v44 = vsel %vm520_vm4, %v289_v38, -inf }
 0x2a7   :  { %v364_v35 = vpop.f32.mrf.mxu1 }
 0x2a8   :  { %v365_v36 = vadd.f32 %v364_v35, %v208_v33 }
 0x2a9   :  { %v1077_v37 = vpop.f32.mrf.mxu1 }
 0x2aa   :  { %v524_v39 = vsel %vm520_vm4, %v365_v36, -inf }
 0x2ab   :  { %525 = vmax.xlane.f32.xlu0 %v524_v39  ;;  %v440_v41 = vpop.f32.mrf.mxu1 }
 0x2ac   :  { %v441_v43 = vadd.f32 %v440_v41, %v212_v40 }
 0x2ad   :  { %v1082_v42 = vpop.f32.mrf.mxu1 }
 0x2ae   :  { %v527_v48 = vsel %vm520_vm4, %v441_v43, -inf }
 0x2af   :  { %522 = vmax.xlane.f32.xlu0 %v521_v44  ;;  %v516_v45 = vpop.f32.mrf.mxu1 }
 0x2b0   :  { %v517_v46 = vadd.f32 %v516_v45, %v212_v40 }
 0x2b1   :  { %v1087_v47 = vpop.f32.mrf.mxu1 }
 0x2b2   :  { %v530_v49 = vsel %vm520_vm4, %v517_v46, -inf }
 0x2b3   :  { %528 = vmax.xlane.f32.xlu0 %v527_v48  ;;  %531 = vmax.xlane.f32.xlu1 %v530_v49 }
 0x334   :  { %v526_v50 = vpop.xlane.xlu0 %525 }
 0x335   :  { %v534_v51 = vsub.f32 %v365_v36, %v526_v50 }
 0x337   :  { %v539_v52 = vmul.f32 1.442695, %v534_v51 }
 0x338   :  { %v523_v60 = vpop.xlane.xlu0 %522 }
 0x339   :  { %1134 = vpow2.f32 %v539_v52  ;;  %v533_v61 = vsub.f32 %v289_v38, %v523_v60 }
 0x33b   :  { %v537_v62 = vmul.f32 1.442695, %v533_v61 }
 0x33c   :  { %v532_v53 = vpop.xlane.xlu1 %531  ;;  %v529_v63 = vpop.xlane.xlu0 %528 }
 0x33d   :  { %v536_v54 = vsub.f32 %v517_v46, %v532_v53  ;;  %v535_v0 = vsub.f32 %v441_v43, %v529_v63 }
 0x33f   :  { %v543_v55 = vmul.f32 1.442695, %v536_v54  ;;  %v541_v1 = vmul.f32 1.442695, %v535_v0 }
 0x341   :  { %1136 = vpow2.f32 %v543_v55 }
 0x342   :  { %1138 = vpow2.f32 %v537_v62 }
 0x343   :  { %1140 = vpow2.f32 %v541_v1 }
 0x346   :  { %v1135_v56 = vpop.eup %1134 }
 0x347   :  { %v548_v57 = vsel %vm520_vm4, %v1135_v56, 0.0 }
 0x348   :  { %549 = vadd.xlane.f32.xlu1 %v548_v57 }
 0x34e   :  { %v1137_v58 = vpop.eup %1136 }
 0x34f   :  { %v554_v59 = vsel %vm520_vm4, %v1137_v58, 0.0  ;;  %v1139_v2 = vpop.eup %1138 }
 0x350   :  { %555 = vadd.xlane.f32.xlu0 %v554_v59  ;;  %v545_v3 = vsel %vm520_vm4, %v1139_v2, 0.0  ;;  %v1141_v4 = vpop.eup %1140 }
 0x351   :  { %v551_v5 = vsel %vm520_vm4, %v1141_v4, 0.0 }
 0x359   :  { %645 = vrot.lane.b32.xlu1 %v1367_v11, %s1291_s17 }
 0x366   :  { %797 = vrot.lane.b32.xlu0 %v1372_v12, %s1291_s17 }
 0x37d   :  { %546 = vadd.xlane.f32.xlu1 %v545_v3 }
 0x385   :  { %552 = vadd.xlane.f32.xlu0 %v551_v5 }
 0x38e   :  { %569 = vrot.lane.b32.xlu1 %v1361_v8, %s1291_s17 }
 0x39b   :  { %721 = vrot.lane.b32.xlu0 %v1359_v7, %s1291_s17 }
 0x3d1   :  { %v550_v9 = vpop.xlane.xlu1 %549 }
 0x3d2   :  { %1142 = vrcp.f32 %v550_v9 }
 0x3d5   :  { %v646_v10 = vpop.permute.xlu1 %645 }
 0x3d6   :  { %1094 = vmatpush3.msra.mxu1 %v646_v10 }
 0x3d7   :  { %1103 = vmatprep.subr.mxu1 %v1286_v6 }
 0x3d9   :  { %v556_v11 = vpop.xlane.xlu0 %555 }
 0x3da   :  { %1144 = vrcp.f32 %v556_v11 }
 0x3dd   :  { %v798_v14 = vpop.permute.xlu0 %797 }
 0x3df   :  { %v1143_v12 = vpop.eup %1142 }
 0x3e0   :  { %v562_v13 = vmul.f32 %v1143_v12, %v1135_v56 }
 0x3e2   :  { %1096 = vmatmul.mubr.msk.f32.vlgmr.msra.gmra.mxu1 %vm520_vm4, %v562_v13  ;;  %566 = vst.msk [vmem:[#allocation11 + $0x8] sm:$0xff] %vm520_vm4, %v562_v13 }
 0x3e3   :  { %1104 = vmatpush3.msra.mxu1 %v798_v14  ;;  %1105 = vmatprep.mubr.msk.f32.mxu1 %vm1287_vm1, %v1286_v6 }
 0x3e7   :  { %v1145_v7 = vpop.eup %1144 }
 0x3e8   :  { %v564_v8 = vmul.f32 %v1145_v7, %v1137_v58 }
 0x3ea   :  { %1106 = vmatmul.mubr.msk.f32.vlgmr.msra.gmra.mxu1 %vm520_vm4, %v564_v8  ;;  %568 = vst.msk [vmem:[#allocation11 + $0x18] sm:$0xff] %vm520_vm4, %v564_v8 }
 0x406   :  { %v547_v15 = vpop.xlane.xlu1 %546 }
 0x407   :  { %1146 = vrcp.f32 %v547_v15 }
 0x40a   :  { %v570_v16 = vpop.permute.xlu1 %569 }
 0x40b   :  { %1089 = vmatpush3.msra.mxu0 %v570_v16 }
 0x40c   :  { %1098 = vmatprep.subr.mxu0 %v1286_v6 }
 0x40e   :  { %v553_v17 = vpop.xlane.xlu0 %552 }
 0x40f   :  { %1148 = vrcp.f32 %v553_v17 }
 0x412   :  { %v722_v20 = vpop.permute.xlu0 %721 }
 0x414   :  { %v1147_v18 = vpop.eup %1146 }
 0x415   :  { %v561_v19 = vmul.f32 %v1147_v18, %v1139_v2 }
 0x417   :  { %1091 = vmatmul.mubr.msk.f32.vlgmr.msra.gmra.mxu0 %vm520_vm4, %v561_v19  ;;  %565 = vst.msk [vmem:[#allocation11] sm:$0xff] %vm520_vm4, %v561_v19 }
 0x418   :  { %1099 = vmatpush3.msra.mxu0 %v722_v20  ;;  %1100 = vmatprep.mubr.msk.f32.mxu0 %vm1287_vm1, %v1286_v6 }
 0x419   :  { %1108 = vmatprep.subr.mxu0 %v886_v23 }
 0x41c   :  { %v1149_v21 = vpop.eup %1148 }
 0x41d   :  { %v563_v22 = vmul.f32 %v1149_v21, %v1141_v4 }
 0x41f   :  { %1101 = vmatmul.mubr.msk.f32.vlgmr.msra.gmra.mxu0 %vm520_vm4, %v563_v22  ;;  %567 = vst.msk [vmem:[#allocation11 + $0x10] sm:$0xff] %vm520_vm4, %v563_v22 }
 0x420   :  { %1109 = vmatpush3.msra.mxu0 %v886_v23 }
 0x421   :  { %1110 = vmatprep.subr.mxu0 %v885_v24 }
 0x422   :  { %1111 = vmatpush3.msra.mxu0 %v885_v24 }
 0x423   :  { %1112 = vmatprep.subr.mxu0 %v884_v25 }
 0x424   :  { %1113 = vmatpush3.msra.mxu0 %v884_v25 }
 0x425   :  { %1114 = vmatprep.subr.mxu0 %v883_v26 }
 0x426   :  { %1115 = vmatpush3.msra.mxu0 %v883_v26 }
 0x4a2   :  { %v717_v27 = vpop.f32.mrf.mxu1 }
 0x4a3   :  { %875 = vrot.lane.b32.xlu1 %v717_v27, %s1292_s18 }
 0x4a4   :  { %v1097_v6 = vpop.f32.mrf.mxu1 }
 0x4aa   :  { %v869_v28 = vpop.f32.mrf.mxu1 }
 0x4ab   :  { %877 = vrot.lane.b32.xlu1 %v869_v28, %s1292_s18 }
 0x4ac   :  { %v1107_v29 = vpop.f32.mrf.mxu1 }
 0x4d7   :  { %v641_v30 = vpop.f32.mrf.mxu0 }
 0x4d9   :  { %v1092_v31 = vpop.f32.mrf.mxu0 }
 0x4df   :  { %v793_v32 = vpop.f32.mrf.mxu0 }
 0x4e1   :  { %v1102_v33 = vpop.f32.mrf.mxu0 }
 0x515   :  { %v876_v34 = vpop.permute.xlu1 %875 }
 0x516   :  { %v881_v35 = vsel %vm217_vm2, %v641_v30, %v876_v34 }
 0x517   :  { %1116 = vmatprep.mubr.msk.f32.mxu0 %vm83_vm0, %v881_v35 }
 0x51d   :  { %v878_v36 = vpop.permute.xlu1 %877 }
 0x51e   :  { %v882_v37 = vsel %vm217_vm2, %v793_v32, %v878_v36 }
 0x51f   :  { %1117 = vmatmul.mubr.msk.f32.vlgmr.msra.gmra.mxu0 %vm83_vm0, %v882_v37 }
 0x520   :  { %1241 = shalt.err (!%p1238_p10)
}
 0x521   :  { %1000 = dma.vmem_to_hbm [thread:$0]  %s995_s20, 512, %s1449_s6, [#allocation12], %s1282_s29, %s1282_s29, %s1283_s30  }
 0x522   :  { %v1026_v38 = vld [vmem:[%s1447_s4] ss:$0 sm:$0xff]  ;;  %s1294_s26 = smov [#allocation10]  }
 0x523   :  { %s982_s27 = sshll.u32 %s1294_s26, 4  ;;  %s983_s27 = int_to_ptr.vmem [resolvable:$true] %s982_s27 }
 0x524   :  { %s1250_s28 = scalar_lea.vmem %s983_s27, 256  ;;  %p1255_p12 = scmp.lt.s32.totalorder %s983_s27, %s983_s27 }
 0x525   :  { %p1251_p11 = scmp.ne.s32.totalorder %s983_s27, %s1250_s28  ;;  %p1256_p13 = scmp.lt.s32.totalorder %s1250_s28, %s1250_s28 }
 0x527   :  { %p1257_p0 = por %p1256_p13, %p1255_p12 }
 0x529   :  { %p1258_p1 = pnand %p1257_p0, %p1251_p11 }
 0x5df   :  { %v1118_v39 = vpop.f32.mrf.mxu0 }
 0x5e0   :  { %v972_v40 = vadd.f32 %v1118_v39, %v1026_v38 }
 0x5e1   :  { %v966_v41 = vpop.f32.mrf.mxu0 }
 0x5e2   :  { %976 = vst.msk [vmem:[#allocation10 + $0x8] sm:$0xff] %vm83_vm0, %v972_v40  ;;  %v967_v42 = vadd.f32 %v1026_v38, %v966_v41 }
 0x5e4   :  { %975 = vst.msk [vmem:[#allocation10] sm:$0xff] %vm83_vm0, %v967_v42 }
 0x5e5   :  { %1261 = shalt.err (!%p1258_p1)
}
 0x5e6   :  { %988 = dma.vmem_to_hbm [thread:$0]  %s983_s27, 256, %s1448_s5, [#allocation4], %s1282_s29, %s1282_s29, %s1283_s30  }
 0x5e7   :  { %1276 = dma.done.wait [#allocation4], 256  }
 0x5e8   :  { %1277 = vsyncadd [#allocation4], 4294967040 }
 0x5e9   :  { %1278 = dma.done.wait [#allocation12], 512  }
 0x5ea   :  { %1279 = vsyncadd [#allocation12], 4294966784 }
 0x5eb   :  { %1007 = vsyncpa [#allocation3], 1 }
 0x5ec   :  { %1008 = vsyncpa [#allocation6], 1 }
 0x5ed   :  { %1009 = vsyncpa [#allocation9], 1 }
 0x5ee   :  { %1010 = vsyncpa [#allocation4], 1 }
 0x5ef   :  { %1011 = vsyncpa [#allocation12], 1 }

</bundles_post_ra>
